<compile_context>
chip_gen: v6e
topology: v6e:2x2x1
jax: 0.10.0
libtpu: 0.0.40
codegen_flags: <defaults>
</compile_context>

<pallas_src>
import jax
import jax.numpy as jnp
from jax.experimental import pallas as pl
from jax.experimental.pallas import tpu as pltpu

WEIGHT1 = 1.0
WEIGHT2 = 1.0
LANES = 128


def _d3m_loss_kernel(t_ref, sqrt_t_ref, wphi_ref, bphi_ref, weps_ref, beps_ref,
                     x0_ref, noise_ref, loss_ref):
    """One (batch, spatial-row-tile) grid step.

    x0_ref / noise_ref / loss_ref : (1, C, R_TILE, 128) VMEM blocks (lane-dense).
    t_ref / sqrt_t_ref            : (B,) SMEM, indexed by the batch grid coord.
    wphi_ref / weps_ref           : (C, C) SMEM, layout [in_channel, out_channel].
    bphi_ref / beps_ref           : (C,) SMEM.
    """
    b = pl.program_id(0)
    t = t_ref[b]                       # scalar f32
    beta = sqrt_t_ref[b]               # sqrt(t), precomputed host-side
    one_minus_t = 1.0 - t

    C = x0_ref.shape[1]

    # Per-channel dense (R_TILE, 128) loads; hoisted once, reused below.
    x0_c = [x0_ref[0, c] for c in range(C)]
    noise_c = [noise_ref[0, c] for c in range(C)]
    # x_t = x_0 + t*phi + beta_t(t)*noise  with phi = -x_0
    xt_c = [one_minus_t * x0_c[c] + beta * noise_c[c] for c in range(C)]

    for d in range(C):                 # unrolled VPU FMA channel mix (no MXU at C=4)
        acc_p = xt_c[0] * wphi_ref[0, d]
        acc_e = xt_c[0] * weps_ref[0, d]
        for c in range(1, C):
            acc_p = acc_p + xt_c[c] * wphi_ref[c, d]
            acc_e = acc_e + xt_c[c] * weps_ref[c, d]
        phi_theta_d = acc_p + t * bphi_ref[d]
        eps_theta_d = acc_e + t * beps_ref[d]
        # (phi - phi_theta)^2 = (-x0 - phi_theta)^2 = (x0 + phi_theta)^2
        l1 = (x0_c[d] + phi_theta_d) ** 2
        l2 = (noise_c[d] - eps_theta_d) ** 2
        if WEIGHT1 == 1.0 and WEIGHT2 == 1.0:   # Python-level: no vmul emitted
            loss_ref[0, d] = l1 + l2
        else:
            loss_ref[0, d] = WEIGHT1 * l1 + WEIGHT2 * l2


def _pick_row_tile(rows, max_rows=256):
    """Return (row_tile, rows_padded).

    If the image fits within max_rows rows of 128 lanes, use the full extent
    (legal block dim even when not a multiple of 8). Otherwise use a fixed
    multiple-of-8 tile and pad rows up to a multiple of it — never fall back
    to a full-HW block (bounded VMEM working set on every generation).
    """
    if rows <= max_rows:
        return rows, rows
    r_tile = max_rows                         # multiple of 8 by construction
    rows_padded = ((rows + r_tile - 1) // r_tile) * r_tile
    return r_tile, rows_padded


def d3m_forward_loss(x_0_nchw, noise_nchw, t, w_phi, b_phi, w_eps, b_eps,
                     *, max_row_tile=256):
    """x_0, noise: (B, C, H, W) f32; t: (B,) f32; w_*: (C, C) [in,out]; b_*: (C,)."""
    B, C, H, W = x_0_nchw.shape
    HW = H * W
    rows = -(-HW // LANES)                    # ceil(HW / 128)
    r_tile, rows_padded = _pick_row_tile(rows, max_row_tile)
    hw_padded = rows_padded * LANES

    # Pure reshape NCHW -> (B, C, HW); pad spatial tail only if needed.
    x0_flat = x_0_nchw.reshape(B, C, HW)
    noise_flat = noise_nchw.reshape(B, C, HW)
    if hw_padded != HW:
        pad = hw_padded - HW
        x0_flat = jnp.pad(x0_flat, ((0, 0), (0, 0), (0, pad)))
        noise_flat = jnp.pad(noise_flat, ((0, 0), (0, 0), (0, pad)))
    x0_r = x0_flat.reshape(B, C, rows_padded, LANES)
    noise_r = noise_flat.reshape(B, C, rows_padded, LANES)

    t = t.astype(jnp.float32)
    sqrt_t = jnp.sqrt(t)

    n_r = rows_padded // r_tile
    blk = pl.BlockSpec((1, C, r_tile, LANES), lambda b, j: (b, 0, j, 0))
    smem = pl.BlockSpec(memory_space=pltpu.MemorySpace.SMEM)

    block_bytes = C * r_tile * LANES * 4
    # 3 streams x 2 pipeline buffers, plus generous headroom; min = default 32 MiB.
    vmem_budget = max(32 * 1024 * 1024, 8 * block_bytes)

    bytes_accessed = 3 * B * C * hw_padded * 4        # read x0 + noise, write loss
    flops = B * hw_padded * C * (4 * C + 10)          # x_t + channel mix + loss

    loss_r = pl.pallas_call(
        _d3m_loss_kernel,
        out_shape=jax.ShapeDtypeStruct((B, C, rows_padded, LANES), jnp.float32),
        grid_spec=pltpu.PrefetchScalarGridSpec(
            num_scalar_prefetch=0,
            grid=(B, n_r),
            in_specs=[smem, smem, smem, smem, smem, smem, blk, blk],
            out_specs=blk,
        ),
        compiler_params=pltpu.CompilerParams(
            dimension_semantics=("parallel", "parallel"),
            vmem_limit_bytes=int(vmem_budget)),
        cost_estimate=pl.CostEstimate(
            flops=int(flops), transcendentals=0,
            bytes_accessed=int(bytes_accessed)),
    )(t, sqrt_t, w_phi, b_phi, w_eps, b_eps, x0_r, noise_r)

    loss_flat = loss_r.reshape(B, C, hw_padded)
    if hw_padded != HW:
        loss_flat = loss_flat[:, :, :HW]
    return loss_flat.reshape(B, C, H, W)


def _reference_loss(x_0, noise, t, w_phi, b_phi, w_eps, b_eps):
    """Pure-JAX reference mirroring the PyTorch forward (NCHW)."""
    B = x_0.shape[0]
    t_b = t.reshape(B, 1, 1, 1)
    phi = -x_0
    x_t = x_0 + t_b * phi + jnp.sqrt(t_b) * noise
    phi_theta = jnp.einsum('bchw,cd->bdhw', x_t, w_phi) + t_b * b_phi.reshape(1, -1, 1, 1)
    eps_theta = jnp.einsum('bchw,cd->bdhw', x_t, w_eps) + t_b * b_eps.reshape(1, -1, 1, 1)
    l1 = (phi - phi_theta) ** 2
    l2 = (noise - eps_theta) ** 2
    return WEIGHT1 * l1 + WEIGHT2 * l2


if __name__ == "__main__":
    B, C, H, W = 2, 4, 16, 16

    key = jax.random.PRNGKey(0)
    k_x, k_noise, k_t, k_wp, k_bp, k_we, k_be = jax.random.split(key, 7)

    # inputs (torch.randn_like / torch.rand replaced by deterministic JAX PRNG)
    x_0 = jax.random.normal(k_x, (B, C, H, W), dtype=jnp.float32)
    noise = jax.random.normal(k_noise, (B, C, H, W), dtype=jnp.float32)
    t = jax.random.uniform(k_t, (B,), dtype=jnp.float32, minval=1e-4, maxval=1.0)

    # deterministic synthetic net parameters (1x1-conv channel maps, [in, out])
    w_phi = 0.1 * jax.random.normal(k_wp, (C, C), dtype=jnp.float32)
    b_phi = 0.1 * jax.random.normal(k_bp, (C,), dtype=jnp.float32)
    w_eps = 0.1 * jax.random.normal(k_we, (C, C), dtype=jnp.float32)
    b_eps = 0.1 * jax.random.normal(k_be, (C,), dtype=jnp.float32)

    loss = d3m_forward_loss(x_0, noise, t, w_phi, b_phi, w_eps, b_eps)
    loss = jax.block_until_ready(loss)

    ref = _reference_loss(x_0, noise, t, w_phi, b_phi, w_eps, b_eps)
    assert loss.shape == (B, C, H, W)
    assert jnp.allclose(loss, ref, atol=1e-5, rtol=1e-5), "mismatch vs reference"

    # TODO(synk): sample()/sample_loop() (iterative reverse diffusion) is a host-side
    # loop over the net, not a single hot kernel; only the forward-pass loss is in Pallas.
    print("KERNEL_OK")
</pallas_src>

<mosaic_0001>
module attributes {stable_mosaic.version = 11 : i64} {
  func.func @_d3m_loss_kernel(%arg0: i32, %arg1: i32, %arg2: memref<2xf32, #tpu.memory_space<smem>>, %arg3: memref<2xf32, #tpu.memory_space<smem>>, %arg4: memref<4x4xf32, #tpu.memory_space<smem>>, %arg5: memref<4xf32, #tpu.memory_space<smem>>, %arg6: memref<4x4xf32, #tpu.memory_space<smem>>, %arg7: memref<4xf32, #tpu.memory_space<smem>>, %arg8: memref<1x4x2x128xf32, #tpu.memory_space<vmem>>, %arg9: memref<1x4x2x128xf32, #tpu.memory_space<vmem>>, %arg10: memref<1x4x2x128xf32, #tpu.memory_space<vmem>>) attributes {dimension_semantics = [#tpu.dimension_semantics<parallel>, #tpu.dimension_semantics<parallel>], iteration_bounds = array<i64: 2, 1>, scalar_prefetch = 0 : i64, scratch_operands = 0 : i64, tpu.core_type = #tpu.core_type<tc>, window_params = [{transform_indices = @transform_0, window_bounds = array<i64: 2>}, {transform_indices = @transform_1, window_bounds = array<i64: 2>}, {transform_indices = @transform_2, window_bounds = array<i64: 4, 4>}, {transform_indices = @transform_3, window_bounds = array<i64: 4>}, {transform_indices = @transform_4, window_bounds = array<i64: 4, 4>}, {transform_indices = @transform_5, window_bounds = array<i64: 4>}, {transform_indices = @transform_6, window_bounds = array<i64: 1, 4, 2, 128>}, {transform_indices = @transform_7, window_bounds = array<i64: 1, 4, 2, 128>}, {transform_indices = @transform_8, window_bounds = array<i64: 1, 4, 2, 128>}]} {
    %0 = arith.index_cast %arg0 : i32 to index
    %1 = memref.load %arg2[%0] : memref<2xf32, #tpu.memory_space<smem>>
    %2 = arith.index_cast %arg0 : i32 to index
    %3 = memref.load %arg3[%2] : memref<2xf32, #tpu.memory_space<smem>>
    %cst = arith.constant 1.000000e+00 : f32
    %4 = arith.subf %cst, %1 : f32
    %c0 = arith.constant 0 : index
    %c0_0 = arith.constant 0 : index
    %c0_1 = arith.constant 0 : index
    %c0_2 = arith.constant 0 : index
    %5 = vector.load %arg8[%c0, %c0_0, %c0_1, %c0_2] : memref<1x4x2x128xf32, #tpu.memory_space<vmem>>, vector<1x1x2x128xf32>
    %6 = vector.shape_cast %5 : vector<1x1x2x128xf32> to vector<2x128xf32>
    %c0_3 = arith.constant 0 : index
    %c1 = arith.constant 1 : index
    %c0_4 = arith.constant 0 : index
    %c0_5 = arith.constant 0 : index
    %7 = vector.load %arg8[%c0_3, %c1, %c0_4, %c0_5] : memref<1x4x2x128xf32, #tpu.memory_space<vmem>>, vector<1x1x2x128xf32>
    %8 = vector.shape_cast %7 : vector<1x1x2x128xf32> to vector<2x128xf32>
    %c0_6 = arith.constant 0 : index
    %c2 = arith.constant 2 : index
    %c0_7 = arith.constant 0 : index
    %c0_8 = arith.constant 0 : index
    %9 = vector.load %arg8[%c0_6, %c2, %c0_7, %c0_8] : memref<1x4x2x128xf32, #tpu.memory_space<vmem>>, vector<1x1x2x128xf32>
    %10 = vector.shape_cast %9 : vector<1x1x2x128xf32> to vector<2x128xf32>
    %c0_9 = arith.constant 0 : index
    %c3 = arith.constant 3 : index
    %c0_10 = arith.constant 0 : index
    %c0_11 = arith.constant 0 : index
    %11 = vector.load %arg8[%c0_9, %c3, %c0_10, %c0_11] : memref<1x4x2x128xf32, #tpu.memory_space<vmem>>, vector<1x1x2x128xf32>
    %12 = vector.shape_cast %11 : vector<1x1x2x128xf32> to vector<2x128xf32>
    %c0_12 = arith.constant 0 : index
    %c0_13 = arith.constant 0 : index
    %c0_14 = arith.constant 0 : index
    %c0_15 = arith.constant 0 : index
    %13 = vector.load %arg9[%c0_12, %c0_13, %c0_14, %c0_15] : memref<1x4x2x128xf32, #tpu.memory_space<vmem>>, vector<1x1x2x128xf32>
    %14 = vector.shape_cast %13 : vector<1x1x2x128xf32> to vector<2x128xf32>
    %c0_16 = arith.constant 0 : index
    %c1_17 = arith.constant 1 : index
    %c0_18 = arith.constant 0 : index
    %c0_19 = arith.constant 0 : index
    %15 = vector.load %arg9[%c0_16, %c1_17, %c0_18, %c0_19] : memref<1x4x2x128xf32, #tpu.memory_space<vmem>>, vector<1x1x2x128xf32>
    %16 = vector.shape_cast %15 : vector<1x1x2x128xf32> to vector<2x128xf32>
    %c0_20 = arith.constant 0 : index
    %c2_21 = arith.constant 2 : index
    %c0_22 = arith.constant 0 : index
    %c0_23 = arith.constant 0 : index
    %17 = vector.load %arg9[%c0_20, %c2_21, %c0_22, %c0_23] : memref<1x4x2x128xf32, #tpu.memory_space<vmem>>, vector<1x1x2x128xf32>
    %18 = vector.shape_cast %17 : vector<1x1x2x128xf32> to vector<2x128xf32>
    %c0_24 = arith.constant 0 : index
    %c3_25 = arith.constant 3 : index
    %c0_26 = arith.constant 0 : index
    %c0_27 = arith.constant 0 : index
    %19 = vector.load %arg9[%c0_24, %c3_25, %c0_26, %c0_27] : memref<1x4x2x128xf32, #tpu.memory_space<vmem>>, vector<1x1x2x128xf32>
    %20 = vector.shape_cast %19 : vector<1x1x2x128xf32> to vector<2x128xf32>
    %21 = vector.broadcast %4 : f32 to vector<2x128xf32>
    %22 = arith.mulf %21, %6 : vector<2x128xf32>
    %23 = vector.broadcast %3 : f32 to vector<2x128xf32>
    %24 = arith.mulf %23, %14 : vector<2x128xf32>
    %25 = arith.addf %22, %24 : vector<2x128xf32>
    %26 = vector.broadcast %4 : f32 to vector<2x128xf32>
    %27 = arith.mulf %26, %8 : vector<2x128xf32>
    %28 = vector.broadcast %3 : f32 to vector<2x128xf32>
    %29 = arith.mulf %28, %16 : vector<2x128xf32>
    %30 = arith.addf %27, %29 : vector<2x128xf32>
    %31 = vector.broadcast %4 : f32 to vector<2x128xf32>
    %32 = arith.mulf %31, %10 : vector<2x128xf32>
    %33 = vector.broadcast %3 : f32 to vector<2x128xf32>
    %34 = arith.mulf %33, %18 : vector<2x128xf32>
    %35 = arith.addf %32, %34 : vector<2x128xf32>
    %36 = vector.broadcast %4 : f32 to vector<2x128xf32>
    %37 = arith.mulf %36, %12 : vector<2x128xf32>
    %38 = vector.broadcast %3 : f32 to vector<2x128xf32>
    %39 = arith.mulf %38, %20 : vector<2x128xf32>
    %40 = arith.addf %37, %39 : vector<2x128xf32>
    %c0_28 = arith.constant 0 : index
    %c0_29 = arith.constant 0 : index
    %41 = memref.load %arg4[%c0_28, %c0_29] : memref<4x4xf32, #tpu.memory_space<smem>>
    %42 = vector.broadcast %41 : f32 to vector<2x128xf32>
    %43 = arith.mulf %25, %42 : vector<2x128xf32>
    %c0_30 = arith.constant 0 : index
    %c0_31 = arith.constant 0 : index
    %44 = memref.load %arg6[%c0_30, %c0_31] : memref<4x4xf32, #tpu.memory_space<smem>>
    %45 = vector.broadcast %44 : f32 to vector<2x128xf32>
    %46 = arith.mulf %25, %45 : vector<2x128xf32>
    %c1_32 = arith.constant 1 : index
    %c0_33 = arith.constant 0 : index
    %47 = memref.load %arg4[%c1_32, %c0_33] : memref<4x4xf32, #tpu.memory_space<smem>>
    %48 = vector.broadcast %47 : f32 to vector<2x128xf32>
    %49 = arith.mulf %30, %48 : vector<2x128xf32>
    %50 = arith.addf %43, %49 : vector<2x128xf32>
    %c1_34 = arith.constant 1 : index
    %c0_35 = arith.constant 0 : index
    %51 = memref.load %arg6[%c1_34, %c0_35] : memref<4x4xf32, #tpu.memory_space<smem>>
    %52 = vector.broadcast %51 : f32 to vector<2x128xf32>
    %53 = arith.mulf %30, %52 : vector<2x128xf32>
    %54 = arith.addf %46, %53 : vector<2x128xf32>
    %c2_36 = arith.constant 2 : index
    %c0_37 = arith.constant 0 : index
    %55 = memref.load %arg4[%c2_36, %c0_37] : memref<4x4xf32, #tpu.memory_space<smem>>
    %56 = vector.broadcast %55 : f32 to vector<2x128xf32>
    %57 = arith.mulf %35, %56 : vector<2x128xf32>
    %58 = arith.addf %50, %57 : vector<2x128xf32>
    %c2_38 = arith.constant 2 : index
    %c0_39 = arith.constant 0 : index
    %59 = memref.load %arg6[%c2_38, %c0_39] : memref<4x4xf32, #tpu.memory_space<smem>>
    %60 = vector.broadcast %59 : f32 to vector<2x128xf32>
    %61 = arith.mulf %35, %60 : vector<2x128xf32>
    %62 = arith.addf %54, %61 : vector<2x128xf32>
    %c3_40 = arith.constant 3 : index
    %c0_41 = arith.constant 0 : index
    %63 = memref.load %arg4[%c3_40, %c0_41] : memref<4x4xf32, #tpu.memory_space<smem>>
    %64 = vector.broadcast %63 : f32 to vector<2x128xf32>
    %65 = arith.mulf %40, %64 : vector<2x128xf32>
    %66 = arith.addf %58, %65 : vector<2x128xf32>
    %c3_42 = arith.constant 3 : index
    %c0_43 = arith.constant 0 : index
    %67 = memref.load %arg6[%c3_42, %c0_43] : memref<4x4xf32, #tpu.memory_space<smem>>
    %68 = vector.broadcast %67 : f32 to vector<2x128xf32>
    %69 = arith.mulf %40, %68 : vector<2x128xf32>
    %70 = arith.addf %62, %69 : vector<2x128xf32>
    %c0_44 = arith.constant 0 : index
    %71 = memref.load %arg5[%c0_44] : memref<4xf32, #tpu.memory_space<smem>>
    %72 = arith.mulf %1, %71 : f32
    %73 = vector.broadcast %72 : f32 to vector<2x128xf32>
    %74 = arith.addf %66, %73 : vector<2x128xf32>
    %c0_45 = arith.constant 0 : index
    %75 = memref.load %arg7[%c0_45] : memref<4xf32, #tpu.memory_space<smem>>
    %76 = arith.mulf %1, %75 : f32
    %77 = vector.broadcast %76 : f32 to vector<2x128xf32>
    %78 = arith.addf %70, %77 : vector<2x128xf32>
    %79 = arith.addf %6, %74 : vector<2x128xf32>
    %80 = arith.mulf %79, %79 : vector<2x128xf32>
    %81 = arith.subf %14, %78 : vector<2x128xf32>
    %82 = arith.mulf %81, %81 : vector<2x128xf32>
    %83 = arith.addf %80, %82 : vector<2x128xf32>
    %c0_46 = arith.constant 0 : index
    %c0_47 = arith.constant 0 : index
    %c0_48 = arith.constant 0 : index
    %c0_49 = arith.constant 0 : index
    %84 = vector.load %arg10[%c0_46, %c0_47, %c0_48, %c0_49] : memref<1x4x2x128xf32, #tpu.memory_space<vmem>>, vector<1x1x2x128xf32>
    %85 = vector.shape_cast %84 : vector<1x1x2x128xf32> to vector<2x128xf32>
    %86 = vector.shape_cast %83 : vector<2x128xf32> to vector<1x1x2x128xf32>
    tpu.vector_store %arg10[%c0_46, %c0_47, %c0_48, %c0_49], %86 {strides = array<i32>} : memref<1x4x2x128xf32, #tpu.memory_space<vmem>>, vector<1x1x2x128xf32>,
    %c0_50 = arith.constant 0 : index
    %c1_51 = arith.constant 1 : index
    %87 = memref.load %arg4[%c0_50, %c1_51] : memref<4x4xf32, #tpu.memory_space<smem>>
    %88 = vector.broadcast %87 : f32 to vector<2x128xf32>
    %89 = arith.mulf %25, %88 : vector<2x128xf32>
    %c0_52 = arith.constant 0 : index
    %c1_53 = arith.constant 1 : index
    %90 = memref.load %arg6[%c0_52, %c1_53] : memref<4x4xf32, #tpu.memory_space<smem>>
    %91 = vector.broadcast %90 : f32 to vector<2x128xf32>
    %92 = arith.mulf %25, %91 : vector<2x128xf32>
    %c1_54 = arith.constant 1 : index
    %c1_55 = arith.constant 1 : index
    %93 = memref.load %arg4[%c1_54, %c1_55] : memref<4x4xf32, #tpu.memory_space<smem>>
    %94 = vector.broadcast %93 : f32 to vector<2x128xf32>
    %95 = arith.mulf %30, %94 : vector<2x128xf32>
    %96 = arith.addf %89, %95 : vector<2x128xf32>
    %c1_56 = arith.constant 1 : index
    %c1_57 = arith.constant 1 : index
    %97 = memref.load %arg6[%c1_56, %c1_57] : memref<4x4xf32, #tpu.memory_space<smem>>
    %98 = vector.broadcast %97 : f32 to vector<2x128xf32>
    %99 = arith.mulf %30, %98 : vector<2x128xf32>
    %100 = arith.addf %92, %99 : vector<2x128xf32>
    %c2_58 = arith.constant 2 : index
    %c1_59 = arith.constant 1 : index
    %101 = memref.load %arg4[%c2_58, %c1_59] : memref<4x4xf32, #tpu.memory_space<smem>>
    %102 = vector.broadcast %101 : f32 to vector<2x128xf32>
    %103 = arith.mulf %35, %102 : vector<2x128xf32>
    %104 = arith.addf %96, %103 : vector<2x128xf32>
    %c2_60 = arith.constant 2 : index
    %c1_61 = arith.constant 1 : index
    %105 = memref.load %arg6[%c2_60, %c1_61] : memref<4x4xf32, #tpu.memory_space<smem>>
    %106 = vector.broadcast %105 : f32 to vector<2x128xf32>
    %107 = arith.mulf %35, %106 : vector<2x128xf32>
    %108 = arith.addf %100, %107 : vector<2x128xf32>
    %c3_62 = arith.constant 3 : index
    %c1_63 = arith.constant 1 : index
    %109 = memref.load %arg4[%c3_62, %c1_63] : memref<4x4xf32, #tpu.memory_space<smem>>
    %110 = vector.broadcast %109 : f32 to vector<2x128xf32>
    %111 = arith.mulf %40, %110 : vector<2x128xf32>
    %112 = arith.addf %104, %111 : vector<2x128xf32>
    %c3_64 = arith.constant 3 : index
    %c1_65 = arith.constant 1 : index
    %113 = memref.load %arg6[%c3_64, %c1_65] : memref<4x4xf32, #tpu.memory_space<smem>>
    %114 = vector.broadcast %113 : f32 to vector<2x128xf32>
    %115 = arith.mulf %40, %114 : vector<2x128xf32>
    %116 = arith.addf %108, %115 : vector<2x128xf32>
    %c1_66 = arith.constant 1 : index
    %117 = memref.load %arg5[%c1_66] : memref<4xf32, #tpu.memory_space<smem>>
    %118 = arith.mulf %1, %117 : f32
    %119 = vector.broadcast %118 : f32 to vector<2x128xf32>
    %120 = arith.addf %112, %119 : vector<2x128xf32>
    %c1_67 = arith.constant 1 : index
    %121 = memref.load %arg7[%c1_67] : memref<4xf32, #tpu.memory_space<smem>>
    %122 = arith.mulf %1, %121 : f32
    %123 = vector.broadcast %122 : f32 to vector<2x128xf32>
    %124 = arith.addf %116, %123 : vector<2x128xf32>
    %125 = arith.addf %8, %120 : vector<2x128xf32>
    %126 = arith.mulf %125, %125 : vector<2x128xf32>
    %127 = arith.subf %16, %124 : vector<2x128xf32>
    %128 = arith.mulf %127, %127 : vector<2x128xf32>
    %129 = arith.addf %126, %128 : vector<2x128xf32>
    %c0_68 = arith.constant 0 : index
    %c1_69 = arith.constant 1 : index
    %c0_70 = arith.constant 0 : index
    %c0_71 = arith.constant 0 : index
    %130 = vector.load %arg10[%c0_68, %c1_69, %c0_70, %c0_71] : memref<1x4x2x128xf32, #tpu.memory_space<vmem>>, vector<1x1x2x128xf32>
    %131 = vector.shape_cast %130 : vector<1x1x2x128xf32> to vector<2x128xf32>
    %132 = vector.shape_cast %129 : vector<2x128xf32> to vector<1x1x2x128xf32>
    tpu.vector_store %arg10[%c0_68, %c1_69, %c0_70, %c0_71], %132 {strides = array<i32>} : memref<1x4x2x128xf32, #tpu.memory_space<vmem>>, vector<1x1x2x128xf32>,
    %c0_72 = arith.constant 0 : index
    %c2_73 = arith.constant 2 : index
    %133 = memref.load %arg4[%c0_72, %c2_73] : memref<4x4xf32, #tpu.memory_space<smem>>
    %134 = vector.broadcast %133 : f32 to vector<2x128xf32>
    %135 = arith.mulf %25, %134 : vector<2x128xf32>
    %c0_74 = arith.constant 0 : index
    %c2_75 = arith.constant 2 : index
    %136 = memref.load %arg6[%c0_74, %c2_75] : memref<4x4xf32, #tpu.memory_space<smem>>
    %137 = vector.broadcast %136 : f32 to vector<2x128xf32>
    %138 = arith.mulf %25, %137 : vector<2x128xf32>
    %c1_76 = arith.constant 1 : index
    %c2_77 = arith.constant 2 : index
    %139 = memref.load %arg4[%c1_76, %c2_77] : memref<4x4xf32, #tpu.memory_space<smem>>
    %140 = vector.broadcast %139 : f32 to vector<2x128xf32>
    %141 = arith.mulf %30, %140 : vector<2x128xf32>
    %142 = arith.addf %135, %141 : vector<2x128xf32>
    %c1_78 = arith.constant 1 : index
    %c2_79 = arith.constant 2 : index
    %143 = memref.load %arg6[%c1_78, %c2_79] : memref<4x4xf32, #tpu.memory_space<smem>>
    %144 = vector.broadcast %143 : f32 to vector<2x128xf32>
    %145 = arith.mulf %30, %144 : vector<2x128xf32>
    %146 = arith.addf %138, %145 : vector<2x128xf32>
    %c2_80 = arith.constant 2 : index
    %c2_81 = arith.constant 2 : index
    %147 = memref.load %arg4[%c2_80, %c2_81] : memref<4x4xf32, #tpu.memory_space<smem>>
    %148 = vector.broadcast %147 : f32 to vector<2x128xf32>
    %149 = arith.mulf %35, %148 : vector<2x128xf32>
    %150 = arith.addf %142, %149 : vector<2x128xf32>
    %c2_82 = arith.constant 2 : index
    %c2_83 = arith.constant 2 : index
    %151 = memref.load %arg6[%c2_82, %c2_83] : memref<4x4xf32, #tpu.memory_space<smem>>
    %152 = vector.broadcast %151 : f32 to vector<2x128xf32>
    %153 = arith.mulf %35, %152 : vector<2x128xf32>
    %154 = arith.addf %146, %153 : vector<2x128xf32>
    %c3_84 = arith.constant 3 : index
    %c2_85 = arith.constant 2 : index
    %155 = memref.load %arg4[%c3_84, %c2_85] : memref<4x4xf32, #tpu.memory_space<smem>>
    %156 = vector.broadcast %155 : f32 to vector<2x128xf32>
    %157 = arith.mulf %40, %156 : vector<2x128xf32>
    %158 = arith.addf %150, %157 : vector<2x128xf32>
    %c3_86 = arith.constant 3 : index
    %c2_87 = arith.constant 2 : index
    %159 = memref.load %arg6[%c3_86, %c2_87] : memref<4x4xf32, #tpu.memory_space<smem>>
    %160 = vector.broadcast %159 : f32 to vector<2x128xf32>
    %161 = arith.mulf %40, %160 : vector<2x128xf32>
    %162 = arith.addf %154, %161 : vector<2x128xf32>
    %c2_88 = arith.constant 2 : index
    %163 = memref.load %arg5[%c2_88] : memref<4xf32, #tpu.memory_space<smem>>
    %164 = arith.mulf %1, %163 : f32
    %165 = vector.broadcast %164 : f32 to vector<2x128xf32>
    %166 = arith.addf %158, %165 : vector<2x128xf32>
    %c2_89 = arith.constant 2 : index
    %167 = memref.load %arg7[%c2_89] : memref<4xf32, #tpu.memory_space<smem>>
    %168 = arith.mulf %1, %167 : f32
    %169 = vector.broadcast %168 : f32 to vector<2x128xf32>
    %170 = arith.addf %162, %169 : vector<2x128xf32>
    %171 = arith.addf %10, %166 : vector<2x128xf32>
    %172 = arith.mulf %171, %171 : vector<2x128xf32>
    %173 = arith.subf %18, %170 : vector<2x128xf32>
    %174 = arith.mulf %173, %173 : vector<2x128xf32>
    %175 = arith.addf %172, %174 : vector<2x128xf32>
    %c0_90 = arith.constant 0 : index
    %c2_91 = arith.constant 2 : index
    %c0_92 = arith.constant 0 : index
    %c0_93 = arith.constant 0 : index
    %176 = vector.load %arg10[%c0_90, %c2_91, %c0_92, %c0_93] : memref<1x4x2x128xf32, #tpu.memory_space<vmem>>, vector<1x1x2x128xf32>
    %177 = vector.shape_cast %176 : vector<1x1x2x128xf32> to vector<2x128xf32>
    %178 = vector.shape_cast %175 : vector<2x128xf32> to vector<1x1x2x128xf32>
    tpu.vector_store %arg10[%c0_90, %c2_91, %c0_92, %c0_93], %178 {strides = array<i32>} : memref<1x4x2x128xf32, #tpu.memory_space<vmem>>, vector<1x1x2x128xf32>,
    %c0_94 = arith.constant 0 : index
    %c3_95 = arith.constant 3 : index
    %179 = memref.load %arg4[%c0_94, %c3_95] : memref<4x4xf32, #tpu.memory_space<smem>>
    %180 = vector.broadcast %179 : f32 to vector<2x128xf32>
    %181 = arith.mulf %25, %180 : vector<2x128xf32>
    %c0_96 = arith.constant 0 : index
    %c3_97 = arith.constant 3 : index
    %182 = memref.load %arg6[%c0_96, %c3_97] : memref<4x4xf32, #tpu.memory_space<smem>>
    %183 = vector.broadcast %182 : f32 to vector<2x128xf32>
    %184 = arith.mulf %25, %183 : vector<2x128xf32>
    %c1_98 = arith.constant 1 : index
    %c3_99 = arith.constant 3 : index
    %185 = memref.load %arg4[%c1_98, %c3_99] : memref<4x4xf32, #tpu.memory_space<smem>>
    %186 = vector.broadcast %185 : f32 to vector<2x128xf32>
    %187 = arith.mulf %30, %186 : vector<2x128xf32>
    %188 = arith.addf %181, %187 : vector<2x128xf32>
    %c1_100 = arith.constant 1 : index
    %c3_101 = arith.constant 3 : index
    %189 = memref.load %arg6[%c1_100, %c3_101] : memref<4x4xf32, #tpu.memory_space<smem>>
    %190 = vector.broadcast %189 : f32 to vector<2x128xf32>
    %191 = arith.mulf %30, %190 : vector<2x128xf32>
    %192 = arith.addf %184, %191 : vector<2x128xf32>
    %c2_102 = arith.constant 2 : index
    %c3_103 = arith.constant 3 : index
    %193 = memref.load %arg4[%c2_102, %c3_103] : memref<4x4xf32, #tpu.memory_space<smem>>
    %194 = vector.broadcast %193 : f32 to vector<2x128xf32>
    %195 = arith.mulf %35, %194 : vector<2x128xf32>
    %196 = arith.addf %188, %195 : vector<2x128xf32>
    %c2_104 = arith.constant 2 : index
    %c3_105 = arith.constant 3 : index
    %197 = memref.load %arg6[%c2_104, %c3_105] : memref<4x4xf32, #tpu.memory_space<smem>>
    %198 = vector.broadcast %197 : f32 to vector<2x128xf32>
    %199 = arith.mulf %35, %198 : vector<2x128xf32>
    %200 = arith.addf %192, %199 : vector<2x128xf32>
    %c3_106 = arith.constant 3 : index
    %c3_107 = arith.constant 3 : index
    %201 = memref.load %arg4[%c3_106, %c3_107] : memref<4x4xf32, #tpu.memory_space<smem>>
    %202 = vector.broadcast %201 : f32 to vector<2x128xf32>
    %203 = arith.mulf %40, %202 : vector<2x128xf32>
    %204 = arith.addf %196, %203 : vector<2x128xf32>
    %c3_108 = arith.constant 3 : index
    %c3_109 = arith.constant 3 : index
    %205 = memref.load %arg6[%c3_108, %c3_109] : memref<4x4xf32, #tpu.memory_space<smem>>
    %206 = vector.broadcast %205 : f32 to vector<2x128xf32>
    %207 = arith.mulf %40, %206 : vector<2x128xf32>
    %208 = arith.addf %200, %207 : vector<2x128xf32>
    %c3_110 = arith.constant 3 : index
    %209 = memref.load %arg5[%c3_110] : memref<4xf32, #tpu.memory_space<smem>>
    %210 = arith.mulf %1, %209 : f32
    %211 = vector.broadcast %210 : f32 to vector<2x128xf32>
    %212 = arith.addf %204, %211 : vector<2x128xf32>
    %c3_111 = arith.constant 3 : index
    %213 = memref.load %arg7[%c3_111] : memref<4xf32, #tpu.memory_space<smem>>
    %214 = arith.mulf %1, %213 : f32
    %215 = vector.broadcast %214 : f32 to vector<2x128xf32>
    %216 = arith.addf %208, %215 : vector<2x128xf32>
    %217 = arith.addf %12, %212 : vector<2x128xf32>
    %218 = arith.mulf %217, %217 : vector<2x128xf32>
    %219 = arith.subf %20, %216 : vector<2x128xf32>
    %220 = arith.mulf %219, %219 : vector<2x128xf32>
    %221 = arith.addf %218, %220 : vector<2x128xf32>
    %c0_112 = arith.constant 0 : index
    %c3_113 = arith.constant 3 : index
    %c0_114 = arith.constant 0 : index
    %c0_115 = arith.constant 0 : index
    %222 = vector.load %arg10[%c0_112, %c3_113, %c0_114, %c0_115] : memref<1x4x2x128xf32, #tpu.memory_space<vmem>>, vector<1x1x2x128xf32>
    %223 = vector.shape_cast %222 : vector<1x1x2x128xf32> to vector<2x128xf32>
    %224 = vector.shape_cast %221 : vector<2x128xf32> to vector<1x1x2x128xf32>
    tpu.vector_store %arg10[%c0_112, %c3_113, %c0_114, %c0_115], %224 {strides = array<i32>} : memref<1x4x2x128xf32, #tpu.memory_space<vmem>>, vector<1x1x2x128xf32>,
    return
  }
  func.func @transform_0(%arg0: i32, %arg1: i32) -> i32 {
    %c0_i32 = arith.constant 0 : i32
    %c0_i32_0 = arith.constant 0 : i32
    return %c0_i32 : i32
  }
  func.func @transform_1(%arg0: i32, %arg1: i32) -> i32 {
    %c0_i32 = arith.constant 0 : i32
    %c0_i32_0 = arith.constant 0 : i32
    return %c0_i32 : i32
  }
  func.func @transform_2(%arg0: i32, %arg1: i32) -> (i32, i32) {
    %c0_i32 = arith.constant 0 : i32
    %c0_i32_0 = arith.constant 0 : i32
    %c0_i32_1 = arith.constant 0 : i32
    return %c0_i32, %c0_i32_0 : i32, i32
  }
  func.func @transform_3(%arg0: i32, %arg1: i32) -> i32 {
    %c0_i32 = arith.constant 0 : i32
    %c0_i32_0 = arith.constant 0 : i32
    return %c0_i32 : i32
  }
  func.func @transform_4(%arg0: i32, %arg1: i32) -> (i32, i32) {
    %c0_i32 = arith.constant 0 : i32
    %c0_i32_0 = arith.constant 0 : i32
    %c0_i32_1 = arith.constant 0 : i32
    return %c0_i32, %c0_i32_0 : i32, i32
  }
  func.func @transform_5(%arg0: i32, %arg1: i32) -> i32 {
    %c0_i32 = arith.constant 0 : i32
    %c0_i32_0 = arith.constant 0 : i32
    return %c0_i32 : i32
  }
  func.func @transform_6(%arg0: i32, %arg1: i32) -> (i32, i32, i32, i32) {
    %c0_i32 = arith.constant 0 : i32
    %c0_i32_0 = arith.constant 0 : i32
    %c0_i32_1 = arith.constant 0 : i32
    return %arg0, %c0_i32, %arg1, %c0_i32_0 : i32, i32, i32, i32
  }
  func.func @transform_7(%arg0: i32, %arg1: i32) -> (i32, i32, i32, i32) {
    %c0_i32 = arith.constant 0 : i32
    %c0_i32_0 = arith.constant 0 : i32
    %c0_i32_1 = arith.constant 0 : i32
    return %arg0, %c0_i32, %arg1, %c0_i32_0 : i32, i32, i32, i32
  }
  func.func @transform_8(%arg0: i32, %arg1: i32) -> (i32, i32, i32, i32) {
    %c0_i32 = arith.constant 0 : i32
    %c0_i32_0 = arith.constant 0 : i32
    %c0_i32_1 = arith.constant 0 : i32
    return %arg0, %c0_i32, %arg1, %c0_i32_0 : i32, i32, i32, i32
  }
}

</mosaic_0001>

<bundles_post_ra>
// kernel: tpu_custom_call.1
= control target key start
LH: loop header
LB: loop body
LE: loop exit
PB: predicated region body
PF: predicated region fallthrough
CT: control target
= control target key end

     0   :  { %s1760_s0 = inlined_call_operand.hbm [shape: f32[2], index: 0, kind: input, shape index: {}]   ;;  %s1761_s1 = inlined_call_operand.vmem [shape: f32[2], index: 1, kind: input, shape index: {}]   ;;  %s1762_s2 = inlined_call_operand.hbm [shape: f32[4,4], index: 2, kind: input, shape index: {}]   ;;  %s1763_s3 = inlined_call_operand.vmem [shape: f32[4], index: 3, kind: input, shape index: {}]   ;;  %s1764_s4 = inlined_call_operand.vmem [shape: f32[4,4], index: 4, kind: input, shape index: {}]   ;;  %s1765_s5 = inlined_call_operand.vmem [shape: f32[4], index: 5, kind: input, shape index: {}]   ;;  %s1766_s6 = inlined_call_operand.hbm [shape: f32[2,4,2,128], index: 6, kind: input, shape index: {}]   ;;  %s1767_s7 = inlined_call_operand.hbm [shape: f32[2,4,2,128], index: 7, kind: input, shape index: {}]   ;;  %s1768_s8 = inlined_call_operand.hbm [shape: f32[2,4,2,128], index: 8, kind: output, shape index: {}]  }
   0x1   :  { %1775 = sst [smem:[#allocation30_spill]] %s1760_s0 }
   0x2   :  { %1776 = sst [smem:[#allocation31_spill]] %s1761_s1 }
   0x3   :  { %1777 = sst [smem:[#allocation32_spill]] %s1762_s2 }
   0x4   :  { %1778 = sst [smem:[#allocation33_spill]] %s1763_s3 }
   0x5   :  { %1779 = sst [smem:[#allocation34_spill]] %s1764_s4 }
   0x6   :  { %1780 = sst [smem:[#allocation35_spill]] %s1765_s5 }
   0x7   :  { %1781 = sst [smem:[#allocation36_spill]] %s1766_s6 }
   0x8   :  { %13 = vsyncpa [#allocation5], 0 }
   0x9   :  { %14 = vsyncpa [#allocation6], 0 }
   0xa   :  { %15 = vsyncpa [#allocation9], 0 }
   0xb   :  { %16 = vsyncpa [#allocation11], 0 }
   0xc   :  { %17 = vsyncpa [#allocation14], 0 }
   0xd   :  { %18 = vsyncpa [#allocation3], 0 }
   0xe   :  { %20 = vsyncpa [#allocation3 + $0x1], 0 }
   0xf   :  { %21 = vsyncpa [#allocation17], 0 }
  0x10   :  { %23 = vsyncpa [#allocation17 + $0x1], 0 }
  0x11   :  { %24 = vsyncpa [#allocation4], 0 }
  0x12   :  { %26 = vsyncpa [#allocation4 + $0x1], 0  ;;  %s1369_s27 = smov 0   ;;  %s1371_s28 = smov 0  }
  0x13   :  { %s1373_s29 = smov 0   ;;  %s1375_s30 = smov 0  }
  0x14   :  { %s1377_s9 = smov 0   ;;  %s1379_s10 = smov 0  }
  0x15 LB: > { %1782 = sst [smem:[#allocation27_spill]] %s1297_s29  ;;  %s856_s14 = sadd.s32 4294967295, %s1309_s10   ;;  %s1309_s10 = sphi %s1379_s10, %s32_s10   ;;  %s1305_s9 = sphi %s1377_s9, %s1811_s9   ;;  %s1301_s30 = sphi %s1375_s30, %s1810_s30   ;;  %s1297_s29 = sphi %s1373_s29, %s1806_s29   ;;  %s1293_s28 = sphi %s1371_s28, %s1809_s28   ;;  %s1289_s27 = sphi %s1369_s27, %s1808_s27  }
  0x16   : > { %s1783_s3 = sld [smem:[#allocation33_spill]]  ;;  %p858_p0 = scmp.ge.s32.totalorder %s1309_s10, 1 }
  0x17   : > { %p1406_p1 = scmp.eq.s32.totalorder %s856_s14, 0  ;;  %p259_p2 = scmp.lt.s32.totalorder %s1309_s10, 3 }
  0x18   : > { %s1786_s1 = sld [smem:[#allocation31_spill]] }
  0x19   : > { %s1784_s15 = scalar_select %p1406_p1, 1, 0 }
  0x1a   : > { %p1411_p3 = pnand %p858_p0, %p259_p2  ;;  %s1788_s4 = sld [smem:[#allocation34_spill]] }
  0x1c   : > { %s301_s13 = sshll.u32 %s1783_s3, 4  ;;  %p965_p5 = pneg %p1411_p3  ;;  %s302_s13 = int_to_ptr.vmem [resolvable:$true] %s301_s13 }
  0x1d   : > { %s1785_s16 = scalar_select %p1411_p3, 1, 0 }
  0x1e   : > { %s281_s19 = sshll.u32 %s1786_s1, 4  ;;  %p1423_p6 = pnand %p965_p5, %p1406_p1  ;;  %s282_s19 = int_to_ptr.vmem [resolvable:$true] %s281_s19 }
  0x1f   : > { %s1067_s24 = scalar_lea.vmem %s302_s13, 16  ;;  %p1075_p11 = scmp.lt.s32.totalorder %s302_s13, %s302_s13 }
  0x20   : > { %s312_s23 = sshll.u32 %s1788_s4, 4  ;;  %p1068_p7 = scmp.ne.s32.totalorder %s302_s13, %s1067_s24  ;;  %s1430_s23 = int_to_ptr.vmem [resolvable:$true] %s312_s23 }
  0x21   : > { %p1069_p8 = pneg %p1423_p6  ;;  %p1076_p12 = scmp.lt.s32.totalorder %s1067_s24, %s1067_s24 }
  0x23   : > { %p1070_p9 = pnand %p1069_p8, %p1068_p7  ;;  %p1077_p13 = por %p1076_p12, %p1075_p11 }
  0x25   : > { %p1071_p10 = pneg %p1070_p9 }
  0x27   : > { %p1078_p0 = pnand %p1077_p13, %p1071_p10 }
  0x29   : > { %1081 = shalt.err (!%p1078_p0)
}
  0x2a   : > { %s1311_s25 = smov [#allocation10]   ;;  %s1312_s26 = smov [#allocation2]  }
  0x2b   : > { %977 = dma.vmem_to_smem (!%p1423_p6), %s302_s13, 16, %s1311_s25, [#allocation11]  }
  0x2c   : > { %s1789_s0 = sld [smem:[#allocation30_spill]]  ;;  %s1093_s17 = scalar_lea.vmem %s282_s19, 16 }
  0x2d   : > { %p1094_p2 = scmp.ne.s32.totalorder %s282_s19, %s1093_s17  ;;  %p1101_p9 = scmp.lt.s32.totalorder %s282_s19, %s282_s19 }
  0x2e   : > { %p1102_p10 = scmp.lt.s32.totalorder %s1093_s17, %s1093_s17 }
  0x2f   : > { %p1096_p5 = pnand %p1094_p2, %p1069_p8 }
  0x30   : > { %p1103_p11 = por %p1102_p10, %p1101_p9 }
  0x31   : > { %p1097_p7 = pneg %p1096_p5 }
  0x32   : > { %968 = dma.hbm_to_smem (!%p1423_p6), %s1789_s0, 16, %s1312_s26, [#allocation5]  }
  0x33   : > { %p1104_p12 = pnand %p1103_p11, %p1097_p7 }
  0x35   : > { %1107 = shalt.err (!%p1104_p12)
}
  0x36   : > { %s1313_s18 = smov [#allocation7]   ;;  %s1314_s13 = smov [#allocation8]  }
  0x37   : > { %971 = dma.vmem_to_smem (!%p1423_p6), %s282_s19, 16, %s1313_s18, [#allocation6]  }
  0x38   : > { %s1790_s2 = sld [smem:[#allocation32_spill]]  ;;  %s1119_s11 = scalar_lea.vmem %s1430_s23, 64 }
  0x39   : > { %s1791_s5 = sld [smem:[#allocation35_spill]]  ;;  %p1120_p13 = scmp.ne.s32.totalorder %s1430_s23, %s1119_s11 }
  0x3a   : > { %p1127_p5 = scmp.lt.s32.totalorder %s1430_s23, %s1430_s23  ;;  %p1128_p7 = scmp.lt.s32.totalorder %s1119_s11, %s1119_s11 }
  0x3b   : > { %p1122_p0 = pnand %p1120_p13, %p1069_p8 }
  0x3c   : > { %p1129_p9 = por %p1128_p7, %p1127_p5 }
  0x3d   : > { %p1123_p2 = pneg %p1122_p0 }
  0x3e   : > { %974 = dma.hbm_to_smem (!%p1423_p6), %s1790_s2, 64, %s1314_s13, [#allocation9]  }
  0x3f   : > { %s323_s26 = sshll.u32 %s1791_s5, 4  ;;  %p1130_p10 = pnand %p1129_p9, %p1123_p2  ;;  %s324_s26 = int_to_ptr.vmem [resolvable:$true] %s323_s26 }
  0x41   : > { %1133 = shalt.err (!%p1130_p10)
}
  0x42   : > { %s1315_s19 = smov [#allocation12]   ;;  %s1134_s12 = scalar_lea.vmem %s324_s26, 16 }
  0x43   : > { %980 = dma.vmem_to_smem (!%p1423_p6), %s1430_s23, 64, %s1315_s19, [#allocation11]  }
  0x44   : > { %p1135_p11 = scmp.ne.s32.totalorder %s324_s26, %s1134_s12  ;;  %p1142_p0 = scmp.lt.s32.totalorder %s324_s26, %s324_s26 }
  0x45   : > { %p1143_p4 = scmp.lt.s32.totalorder %s1134_s12, %s1134_s12 }
  0x46   : > { %p1137_p12 = pnand %p1135_p11, %p1069_p8 }
  0x47   : > { %p1144_p3 = por %p1143_p4, %p1142_p0 }
  0x48   : > { %p1138_p13 = pneg %p1137_p12 }
  0x4a   : > { %p1145_p1 = pnand %p1144_p3, %p1138_p13 }
  0x4c   : > { %1148 = shalt.err (!%p1145_p1)
}
  0x4d   : > { %s1316_s17 = smov [#allocation13]   ;;  %s857_s23 = sadd.s32 4294967294, %s1309_s10  }
  0x4e   : > { %983 = dma.vmem_to_smem (!%p1423_p6), %s324_s26, 16, %s1316_s17, [#allocation14]  }
  0x4f   : > { %s44_s18 = sadd.s32 1, %s1305_s9  ;;  %s179_s13 = sadd.s32 1, %s1297_s29 }
  0x50   : > { %p46_p1 = scmp.ge.s32.totalorder %s44_s18, 2  ;;  %p186_p3 = scmp.ne.s32.totalorder %s1297_s29, %s1293_s28 }
  0x51   : > { %p187_p4 = scmp.eq.s32.totalorder %s1309_s10, 0  ;;  %p192_p2 = scmp.ne.s32.totalorder %s1293_s28, %s1289_s27 }
  0x52   : > { %s1813_s18 = smov (%p46_p1, %s44_s18), 0  ;;  %p246_p6 = scmp.eq.s32.totalorder %s856_s14, 1 }
  0x53   : > { %1792 = sst [smem:[#allocation28_spill]] %s1813_s18  ;;  %p1480_p8 = por %p187_p4, %p186_p3 }
  0x54   : > { %s174_s21 = ssub.s32 %s1305_s9, %s1813_s18  ;;  %p1794_p7 = scmp.ne.s32.totalorder %s1784_s15, 0 }
  0x55   : > { %p177_p5 = scmp.eq.s32.totalorder %s174_s21, 0  ;;  %p1496_p10 = por %p246_p6, %p186_p3 }
  0x56   : > { %p1492_p9 = por %p1794_p7, %p192_p2  ;;  %p252_p11 = scmp.eq.s32.totalorder %s857_s23, 1 }
  0x57   : > { %s1501_s25 = scalar_select %p177_p5, %s1297_s29, %s179_s13  }
  0x58   : > { %p1503_p12 = por %p252_p11, %p192_p2  ;;  %p1001_p13 = scmp.lt.s32.totalorder %s1309_s10, 2 }
  0x59   : > { %1797 = sst [smem:[#allocation29_spill]] %s1501_s25  ;;  %s1509_s11 = sand.u32 1, %s1297_s29  }
  0x5a   : > { %s1772_s14 = sshll.u32 %s1305_s9, 7  ;;  %s866_s19 = sshll.u32 %s1509_s11, 3 }
  0x5b   : > { %s1799_s6 = sld [smem:[#allocation36_spill]]  ;;  %s338_s0 = scalar_lea.vmem [#allocation15], %s866_s19 }
  0x5c   : > { %s346_s23 = sshll.u32 %s338_s0, 4  ;;  %p1520_p0 = pnand %p1001_p13, %p1480_p8  ;;  %s347_s23 = int_to_ptr.vmem [resolvable:$true] %s346_s23 }
  0x5d   : > { %s335_s1 = scalar_lea.sflag [#allocation3], %s1509_s11  ;;  %s1162_s2 = scalar_lea.vmem %s347_s23, 128 }
  0x5e   : > { %p1151_p1 = pneg %p1520_p0  ;;  %p1163_p3 = scmp.ne.s32.totalorder %s347_s23, %s1162_s2 }
  0x5f   : > { %s1317_s12 = smov [#allocation15]  }
  0x60   : > { %p1165_p4 = pnand %p1163_p3, %p1151_p1  ;;  %s1167_s17 = sshll.u32 %s1317_s12, 4  ;;  %s1168_s17 = int_to_ptr.vmem [resolvable:$false] %s1167_s17 }
  0x61   : > { %s345_s21 = scalar_lea.hbm %s1799_s6, %s1772_s14  ;;  %s1169_s0 = scalar_lea.vmem %s1168_s17, 256 }
  0x62   : > { %p1166_p2 = pneg %p1165_p4  ;;  %p1170_p8 = scmp.lt.s32.totalorder %s347_s23, %s1168_s17 }
  0x63   : > { %p1171_p6 = scmp.lt.s32.totalorder %s1169_s0, %s1162_s2 }
  0x65   : > { %p1172_p5 = por %p1171_p6, %p1170_p8 }
  0x67   : > { %p1173_p7 = pnand %p1172_p5, %p1166_p2 }
  0x69   : > { %1176 = shalt.err (!%p1173_p7)
}
  0x6a   : > { %s1318_s20 = smov 32   ;;  %s1319_s14 = smov 2  }
  0x6b   : > { %987 = dma.hbm_to_vmem [thread:$0]  (!%p1520_p0), %s345_s21, 128, %s347_s23, %s335_s1, %s1318_s20, %s1318_s20, %s1319_s14  }
  0x6c   : > { %s1801_s3 = sshll.u32 %s1305_s9, 7  ;;  %s360_s6 = scalar_lea.vmem [#allocation16], %s866_s19 }
  0x6d   : > { %s367_s12 = scalar_lea.hbm %s1767_s7, %s1801_s3  ;;  %s368_s18 = sshll.u32 %s360_s6, 4  ;;  %s369_s18 = int_to_ptr.vmem [resolvable:$true] %s368_s18 }
  0x6e   : > { %s357_s2 = scalar_lea.sflag [#allocation17], %s1509_s11  ;;  %s1190_s17 = scalar_lea.vmem %s369_s18, 128 }
  0x6f   : > { %p1191_p11 = scmp.ne.s32.totalorder %s369_s18, %s1190_s17  ;;  %s1320_s0 = smov [#allocation16]  }
  0x70   : > { %s1195_s25 = sshll.u32 %s1320_s0, 4  ;;  %s1196_s25 = int_to_ptr.vmem [resolvable:$false] %s1195_s25 }
  0x71   : > { %p1193_p13 = pnand %p1191_p11, %p1151_p1  ;;  %s1197_s29 = scalar_lea.vmem %s1196_s25, 256 }
  0x72   : > { %p1198_p4 = scmp.lt.s32.totalorder %s369_s18, %s1196_s25  ;;  %p1199_p2 = scmp.lt.s32.totalorder %s1197_s29, %s1190_s17 }
  0x73   : > { %p1194_p3 = pneg %p1193_p13 }
  0x74   : > { %p1200_p8 = por %p1199_p2, %p1198_p4 }
  0x76   : > { %p1201_p6 = pnand %p1200_p8, %p1194_p3 }
  0x78   : > { %1204 = shalt.err (!%p1201_p6)
}
  0x79   : > { %990 = dma.hbm_to_vmem [thread:$0]  (!%p1520_p0), %s367_s12, 128, %s369_s18, %s357_s2, %s1318_s20, %s1318_s20, %s1319_s14  }
  0x7a   : > { %p1802_p5 = scmp.ne.s32.totalorder %s1785_s16, 0 }
  0x7b   : > { %p1803_p7 = scmp.ne.s32.totalorder (!%p1802_p5), %s1784_s15, 0 }
  0x7c   : > { %380 = sbr.rel (%p1802_p5) target bundleno = 219 (0xdb), region = 52 }
  0x81   : > { %1256 = dma.done.wait (%p1803_p7), [#allocation5], 16  }
  0x82   : > { %1258 = vsyncadd (%p1803_p7), [#allocation5], 4294967280 }
  0x83   : > { %1260 = dma.done.wait (%p1803_p7), [#allocation6], 16  }
  0x84   : > { %1262 = vsyncadd (%p1803_p7), [#allocation6], 4294967280 }
  0x85   : > { %1264 = dma.done.wait (%p1803_p7), [#allocation9], 64  }
  0x86   : > { %1266 = vsyncadd (%p1803_p7), [#allocation9], 4294967232 }
  0x87   : > { %1268 = dma.done.wait (%p1803_p7), [#allocation11], 80  }
  0x88   : > { %1270 = vsyncadd (%p1803_p7), [#allocation11], 4294967216 }
  0x89   : > { %1272 = dma.done.wait (%p1803_p7), [#allocation14], 16  }
  0x8a   : > { %1274 = vsyncadd (%p1803_p7), [#allocation14], 4294967280  ;;  %s1566_s1 = sand.u32 1, %s1293_s28  }
  0x8b   : > { %s1569_s3 = sshll.u32 %s1566_s1, 3  ;;  %s407_s4 = scalar_lea.sflag [#allocation3], %s1566_s1 }
  0x8c   : > { %s410_s5 = scalar_lea.vmem [#allocation15], %s1569_s3 }
  0x8d   : > { %1276 = dma.done.wait (%p1492_p9), %s407_s4, 128  }
  0x8e   : > { %1278 = vsyncadd (%p1492_p9), %s407_s4, 4294967168  ;;  %s416_s6 = scalar_lea.sflag [#allocation17], %s1566_s1  ;;  %s419_s29 = scalar_lea.vmem [#allocation16], %s1569_s3 }
  0x8f   : > { %1280 = dma.done.wait (%p1492_p9), %s416_s6, 128  }
  0x90   : > { %1282 = vsyncadd (%p1492_p9), %s416_s6, 4294967168 }
  0x91   : > { %424 = sfence }
  0x92   : > { %s1584_s15 = sld [smem:[#allocation2 + %s1301_s30]]  ;;  %v1589_v0 = vld [vmem:[%s410_s5] sm:$0x3]  ;;  %v1591_v1 = vld [vmem:[%s410_s5 + $0x2] sm:$0x3] }
  0x93   : > { %s459_s16 = sld [smem:[#allocation7 + %s1301_s30]]  ;;  %v1593_v2 = vld [vmem:[%s419_s29] sm:$0x3]  ;;  %v1597_v3 = vld [vmem:[%s419_s29 + $0x2] sm:$0x3] }
  0x94   : > { %s1587_s18 = sld [smem:[#allocation8]]  ;;  %v1599_v4 = vld [vmem:[%s419_s29 + $0x4] sm:$0x3]  ;;  %v1602_v5 = vld [vmem:[%s410_s5 + $0x4] sm:$0x3] }
  0x95   : > { %s1595_s25 = sld [smem:[#allocation12]]  ;;  %v1604_v6 = vld [vmem:[%s410_s5 + $0x6] sm:$0x3]  ;;  %v1606_v7 = vld [vmem:[%s419_s29 + $0x6] sm:$0x3] }
  0x96   : > { %s888_s22 = sld [smem:[#allocation8 + $0x80]] }
  0x97   : > { %s889_s14 = sld [smem:[#allocation12 + $0x80]] }
  0x98   : > { %s460_s11 = ssub.f32 1.0, %s1584_s15 }
  0x99   : > { %v477_v8 = vstv %s459_s16  ;;  %s890_s19 = sld [smem:[#allocation8 + $0x100]] }
  0x9a   : > { %v475_v9 = vstv %s460_s11  ;;  %v478_v10 = vmul.f32 %v477_v8, %v1593_v2  ;;  %v481_v11 = vmul.f32 %v1597_v3, %v477_v8  ;;  %v484_v12 = vmul.f32 %v1599_v4, %v477_v8  ;;  %s891_s21 = sld [smem:[#allocation12 + $0x100]] }
  0x9b   : > { %v476_v13 = vmul.f32 %v475_v9, %v1589_v0  ;;  %v480_v14 = vmul.f32 %v1591_v1, %v475_v9  ;;  %v483_v15 = vmul.f32 %v1602_v5, %v475_v9  ;;  %v486_v16 = vmul.f32 %v1604_v6, %v475_v9  ;;  %s892_s23 = sld [smem:[#allocation8 + $0x180]] }
  0x9c   : > { %v487_v17 = vmul.f32 %v1606_v7, %v477_v8  ;;  %v490_v18 = vstv %s1587_s18  ;;  %v493_v19 = vstv %s1595_s25  ;;  %v496_v23 = vstv %s888_s22  ;;  %s893_s13 = sld [smem:[#allocation12 + $0x180]] }
  0x9d   : > { %v1618_v20 = vadd.f32 %v478_v10, %v476_v13  ;;  %v1620_v21 = vadd.f32 %v481_v11, %v480_v14  ;;  %v1622_v22 = vadd.f32 %v484_v12, %v483_v15  ;;  %s1626_s20 = sld [smem:[#allocation10]]  ;;  %v500_v28 = vstv %s889_s14 }
  0x9e   : > { %v1624_v24 = vadd.f32 %v487_v17, %v486_v16  ;;  %s523_s12 = sld [smem:[#allocation13]] }
  0x9f   : > { %v491_v25 = vmul.f32 %v490_v18, %v1618_v20  ;;  %v494_v26 = vmul.f32 %v493_v19, %v1618_v20  ;;  %v497_v27 = vmul.f32 %v496_v23, %v1620_v21  ;;  %v501_v29 = vmul.f32 %v500_v28, %v1620_v21  ;;  %s894_s2 = sld [smem:[#allocation8 + $0x1]] }
  0xa0   : > { %v504_v30 = vstv %s890_s19  ;;  %v508_v33 = vstv %s891_s21  ;;  %s895_s17 = sld [smem:[#allocation12 + $0x1]] }
  0xa1   : > { %v498_v31 = vadd.f32 %v497_v27, %v491_v25  ;;  %v505_v32 = vmul.f32 %v504_v30, %v1622_v22  ;;  %v502_v34 = vadd.f32 %v501_v29, %v494_v26  ;;  %v509_v35 = vmul.f32 %v508_v33, %v1622_v22  ;;  %s896_s0 = sld [smem:[#allocation8 + $0x81]] }
  0xa2   : > { %v512_v36 = vstv %s892_s23  ;;  %v516_v39 = vstv %s893_s13  ;;  %s897_s4 = sld [smem:[#allocation12 + $0x81]] }
  0xa3   : > { %v506_v37 = vadd.f32 %v505_v32, %v498_v31  ;;  %v513_v38 = vmul.f32 %v512_v36, %v1624_v24  ;;  %v510_v40 = vadd.f32 %v509_v35, %v502_v34  ;;  %v517_v41 = vmul.f32 %v516_v39, %v1624_v24  ;;  %s520_s5 = smul.f32 %s1626_s20, %s1584_s15  ;;  %s898_s6 = sld [smem:[#allocation8 + $0x101]] }
  0xa4   : > { %s524_s29 = smul.f32 %s523_s12, %s1584_s15  ;;  %s899_s16 = sld [smem:[#allocation12 + $0x101]] }
  0xa5   : > { %v514_v42 = vadd.f32 %v513_v38, %v506_v37  ;;  %v518_v43 = vadd.f32 %v517_v41, %v510_v40  ;;  %v521_v44 = vstv %s520_s5  ;;  %v534_v45 = vstv %s894_s2  ;;  %s900_s18 = sld [smem:[#allocation8 + $0x181]] }
  0xa6   : > { %v525_v47 = vstv %s524_s29  ;;  %v535_v48 = vmul.f32 %v534_v45, %v1618_v20  ;;  %v537_v49 = vstv %s895_s17  ;;  %s901_s25 = sld [smem:[#allocation12 + $0x181]]  ;;  %s1662_s17 = scalar_lea.vmem [#allocation18], %s1569_s3 }
  0xa7   : > { %v522_v46 = vadd.f32 %v521_v44, %v514_v42  ;;  %v526_v50 = vadd.f32 %v525_v47, %v518_v43  ;;  %v538_v51 = vmul.f32 %v537_v49, %v1618_v20  ;;  %v540_v52 = vstv %s896_s0  ;;  %s1641_s22 = sld [smem:[#allocation10 + $0x1]] }
  0xa8   : > { %v541_v54 = vmul.f32 %v540_v52, %v1620_v21  ;;  %v544_v55 = vstv %s897_s4  ;;  %s1645_s11 = sld [smem:[#allocation13 + $0x1]] }
  0xa9   : > { %v527_v53 = vadd.f32 %v522_v46, %v1589_v0  ;;  %v529_v56 = vsub.f32 %v1593_v2, %v526_v50  ;;  %v545_v57 = vmul.f32 %v544_v55, %v1620_v21  ;;  %v548_v58 = vstv %s898_s6  ;;  %s1649_s14 = sld [smem:[#allocation8 + $0x2]] }
  0xaa   : > { %v542_v60 = vadd.f32 %v541_v54, %v535_v48  ;;  %v549_v61 = vmul.f32 %v548_v58, %v1622_v22  ;;  %v552_v62 = vstv %s899_s16  ;;  %s906_s19 = sld [smem:[#allocation12 + $0x2]] }
  0xab   : > { %v528_v59 = vmul.f32 %v527_v53, %v527_v53  ;;  %v530_v63 = vmul.f32 %v529_v56, %v529_v56  ;;  %v546_v0 = vadd.f32 %v545_v57, %v538_v51  ;;  %v553_v2 = vmul.f32 %v552_v62, %v1622_v22  ;;  %s907_s21 = sld [smem:[#allocation8 + $0x82]] }
  0xac   : > { %v556_v8 = vstv %s900_s18  ;;  %v550_v9 = vadd.f32 %v549_v61, %v542_v60  ;;  %v560_v11 = vstv %s901_s25  ;;  %s908_s23 = sld [smem:[#allocation12 + $0x82]] }
  0xad   : > { %v557_v10 = vmul.f32 %v556_v8, %v1624_v24  ;;  %v531_v12 = vadd.f32 %v530_v63, %v528_v59  ;;  %v554_v13 = vadd.f32 %v553_v2, %v546_v0  ;;  %v561_v14 = vmul.f32 %v560_v11, %v1624_v24  ;;  %s564_s13 = smul.f32 %s1641_s22, %s1584_s15  ;;  %s909_s20 = sld [smem:[#allocation8 + $0x102]] }
  0xae   : > { %s568_s12 = smul.f32 %s1645_s11, %s1584_s15  ;;  %s1659_s2 = sld [smem:[#allocation12 + $0x102]] }
  0xaf   : > { %v558_v15 = vadd.f32 %v557_v10, %v550_v9  ;;  %532 = vst [vmem:[%s1662_s17] sm:$0x3] %v531_v12  ;;  %v562_v16 = vadd.f32 %v561_v14, %v554_v13  ;;  %v565_v17 = vstv %s564_s13  ;;  %v579_v18 = vstv %s1649_s14  ;;  %s911_s0 = sld [smem:[#allocation8 + $0x182]] }
  0xb0   : > { %v569_v23 = vstv %s568_s12  ;;  %v580_v25 = vmul.f32 %v579_v18, %v1618_v20  ;;  %v582_v26 = vstv %s906_s19  ;;  %s912_s4 = sld [smem:[#allocation12 + $0x182]] }
  0xb1   : > { %v566_v19 = vadd.f32 %v565_v17, %v558_v15  ;;  %v570_v27 = vadd.f32 %v569_v23, %v562_v16  ;;  %v583_v28 = vmul.f32 %v582_v26, %v1618_v20  ;;  %v585_v29 = vstv %s907_s21  ;;  %s1668_s5 = sld [smem:[#allocation10 + $0x2]] }
  0xb2   : > { %v586_v31 = vmul.f32 %v585_v29, %v1620_v21  ;;  %v589_v32 = vstv %s908_s23  ;;  %s1672_s3 = sld [smem:[#allocation13 + $0x2]] }
  0xb3   : > { %v571_v30 = vadd.f32 %v1591_v1, %v566_v19  ;;  %v573_v33 = vsub.f32 %v1597_v3, %v570_v27  ;;  %v590_v34 = vmul.f32 %v589_v32, %v1620_v21  ;;  %v593_v35 = vstv %s909_s20  ;;  %s1676_s6 = sld [smem:[#allocation8 + $0x3]] }
  0xb4   : > { %v587_v37 = vadd.f32 %v586_v31, %v580_v25  ;;  %v594_v38 = vmul.f32 %v593_v35, %v1622_v22  ;;  %v597_v39 = vstv %s1659_s2  ;;  %s917_s29 = sld [smem:[#allocation12 + $0x3]]  ;;  %s683_s2 = sshll.u32 %s1662_s17, 4  ;;  %s1706_s2 = int_to_ptr.vmem [resolvable:$true] %s683_s2 }
  0xb5   : > { %v572_v36 = vmul.f32 %v571_v30, %v571_v30  ;;  %v574_v1 = vmul.f32 %v573_v33, %v573_v33  ;;  %v591_v40 = vadd.f32 %v590_v34, %v583_v28  ;;  %v598_v3 = vmul.f32 %v597_v39, %v1622_v22  ;;  %s918_s16 = sld [smem:[#allocation8 + $0x83]] }
  0xb6   : > { %v601_v41 = vstv %s911_s0  ;;  %v595_v42 = vadd.f32 %v594_v38, %v587_v37  ;;  %v605_v44 = vstv %s912_s4  ;;  %s919_s18 = sld [smem:[#allocation12 + $0x83]]  ;;  %s934_s0 = sshll.u32 %s1301_s30, 7 }
  0xb7   : > { %v602_v43 = vmul.f32 %v601_v41, %v1624_v24  ;;  %v575_v45 = vadd.f32 %v574_v1, %v572_v36  ;;  %v599_v46 = vadd.f32 %v598_v3, %v591_v40  ;;  %v606_v47 = vmul.f32 %v605_v44, %v1624_v24  ;;  %s609_s25 = smul.f32 %s1668_s5, %s1584_s15  ;;  %s920_s22 = sld [smem:[#allocation8 + $0x103]] }
  0xb8   : > { %s613_s11 = smul.f32 %s1672_s3, %s1584_s15  ;;  %s921_s14 = sld [smem:[#allocation12 + $0x103]] }
  0xb9   : > { %v603_v48 = vadd.f32 %v602_v43, %v595_v42  ;;  %904 = vst [vmem:[%s1662_s17 + $0x2] sm:$0x3] %v575_v45  ;;  %v607_v49 = vadd.f32 %v606_v47, %v599_v46  ;;  %v610_v50 = vstv %s609_s25  ;;  %v624_v51 = vstv %s1676_s6  ;;  %s922_s19 = sld [smem:[#allocation8 + $0x183]]  ;;  %s1711_s5 = scalar_lea.hbm %s1768_s8, %s934_s0 }
  0xba   : > { %v614_v53 = vstv %s613_s11  ;;  %v625_v54 = vmul.f32 %v624_v51, %v1618_v20  ;;  %v627_v55 = vstv %s917_s29  ;;  %s923_s21 = sld [smem:[#allocation12 + $0x183]]  ;;  %s669_s3 = scalar_lea.sflag [#allocation4], %s1566_s1 }
  0xbb   : > { %v611_v52 = vadd.f32 %v610_v50, %v603_v48  ;;  %v615_v56 = vadd.f32 %v614_v53, %v607_v49  ;;  %v628_v57 = vmul.f32 %v627_v55, %v1618_v20  ;;  %v630_v58 = vstv %s918_s16  ;;  %s924_s23 = sld [smem:[#allocation10 + $0x3]]  ;;  %s1205_s6 = scalar_lea.vmem %s1706_s2, 128 }
  0xbc   : > { %v631_v60 = vmul.f32 %v630_v58, %v1620_v21  ;;  %v634_v61 = vstv %s919_s18  ;;  %s925_s13 = sld [smem:[#allocation13 + $0x3]]  ;;  %p1206_p9 = scmp.ne.s32.totalorder %s1706_s2, %s1205_s6 }
  0xbd   : > { %v616_v59 = vadd.f32 %v1602_v5, %v611_v52  ;;  %v618_v62 = vsub.f32 %v1599_v4, %v615_v56  ;;  %v635_v63 = vmul.f32 %v634_v61, %v1620_v21  ;;  %v638_v0 = vstv %s920_s22  ;;  %s1321_s30 = smov [#allocation18]  }
  0xbe   : > { %v632_v8 = vadd.f32 %v631_v60, %v625_v54  ;;  %v639_v20 = vmul.f32 %v638_v0, %v1622_v22  ;;  %v642_v9 = vstv %s921_s14  ;;  %p1207_p0 = pnand %p1206_p9, %p1496_p10  ;;  %s1209_s29 = sshll.u32 %s1321_s30, 4  ;;  %s1210_s29 = int_to_ptr.vmem [resolvable:$false] %s1209_s29 }
  0xbf   : > { %v617_v2 = vmul.f32 %v616_v59, %v616_v59  ;;  %v619_v10 = vmul.f32 %v618_v62, %v618_v62  ;;  %v636_v11 = vadd.f32 %v635_v63, %v628_v57  ;;  %v643_v5 = vmul.f32 %v642_v9, %v1622_v22  ;;  %s1211_s16 = scalar_lea.vmem %s1210_s29, 256  ;;  %p1212_p11 = scmp.lt.s32.totalorder %s1706_s2, %s1210_s29 }
  0xc0   : > { %v646_v12 = vstv %s922_s19  ;;  %v640_v13 = vadd.f32 %v639_v20, %v632_v8  ;;  %v650_v14 = vstv %s923_s21  ;;  %p1208_p1 = pneg %p1207_p0  ;;  %p1213_p13 = scmp.lt.s32.totalorder %s1211_s16, %s1205_s6 }
  0xc1   : > { %v647_v4 = vmul.f32 %v646_v12, %v1624_v24  ;;  %v620_v21 = vadd.f32 %v619_v10, %v617_v2  ;;  %v644_v15 = vadd.f32 %v643_v5, %v636_v11  ;;  %v651_v16 = vmul.f32 %v650_v14, %v1624_v24  ;;  %s654_s20 = smul.f32 %s924_s23, %s1584_s15 }
  0xc2   : > { %s658_s12 = smul.f32 %s925_s13, %s1584_s15  ;;  %p1214_p3 = por %p1213_p13, %p1212_p11 }
  0xc3   : > { %v648_v17 = vadd.f32 %v647_v4, %v640_v13  ;;  %915 = vst [vmem:[%s1662_s17 + $0x4] sm:$0x3] %v620_v21  ;;  %v652_v18 = vadd.f32 %v651_v16, %v644_v15  ;;  %v655_v19 = vstv %s654_s20 }
  0xc4   : > { %v659_v23 = vstv %s658_s12  ;;  %p1215_p4 = pnand %p1214_p3, %p1208_p1 }
  0xc5   : > { %v656_v22 = vadd.f32 %v655_v19, %v648_v17  ;;  %v660_v25 = vadd.f32 %v659_v23, %v652_v18 }
  0xc7   : > { %v661_v26 = vadd.f32 %v1604_v6, %v656_v22  ;;  %v663_v27 = vsub.f32 %v1606_v7, %v660_v25 }
  0xc9   : > { %v662_v28 = vmul.f32 %v661_v26, %v661_v26  ;;  %v664_v24 = vmul.f32 %v663_v27, %v663_v27 }
  0xcb   : > { %v665_v29 = vadd.f32 %v664_v24, %v662_v28 }
  0xcd   : > { %926 = vst [vmem:[%s1662_s17 + $0x6] sm:$0x3] %v665_v29 }
  0xce   : > { %1218 = shalt.err (!%p1215_p4)
}
  0xcf   : > { %s1219_s17 = scalar_lea.hbm %s1711_s5, 128  ;;  %s1223_s22 = scalar_lea.hbm %s1768_s8, 256 }
  0xd0   : > { %p1220_p2 = scmp.ne.s32.totalorder %s1711_s5, %s1219_s17  ;;  %p1224_p5 = scmp.lt.s32.totalorder %s1711_s5, %s1768_s8 }
  0xd1   : > { %p1225_p7 = scmp.lt.s32.totalorder %s1223_s22, %s1219_s17 }
  0xd2   : > { %p1221_p8 = pnand %p1220_p2, %p1496_p10 }
  0xd3   : > { %p1226_p9 = por %p1225_p7, %p1224_p5 }
  0xd4   : > { %p1222_p6 = pneg %p1221_p8 }
  0xd6   : > { %p1227_p0 = pnand %p1226_p9, %p1222_p6 }
  0xd8   : > { %1230 = shalt.err (!%p1227_p0)
}
  0xd9   : > { %s1322_s19 = smov 32   ;;  %s1323_s21 = smov 2  }
  0xda   : > { %963 = dma.vmem_to_hbm [thread:$0]  (%p1496_p10), %s1706_s2, 128, %s1711_s5, %s669_s3, %s1322_s19, %s1322_s19, %s1323_s21  }
  0xdb PF: > { %s698_s23 = sand.u32 1, %s1289_s27   ;;  %p1804_p1 = scmp.ge.s32.totalorder %s1309_s10, 2 }
  0xdc   : > { %s699_s13 = scalar_lea.sflag [#allocation4], %s698_s23 }
  0xdd   : > { %p992_p11 = pnand %p1804_p1, %p1503_p12 }
  0xdf   : > { %p993_p13 = pneg %p992_p11 }
  0xe1   : > { %1284 = dma.done.wait (%p993_p13), %s699_s13, 128  }
  0xe2   : > { %1286 = vsyncadd (%p993_p13), %s699_s13, 4294967168  ;;  %s32_s10 = sadd.s32 1, %s1309_s10   ;;  %s1805_s20 = sld [smem:[#allocation27_spill]] }
  0xe3   : > { %p29_p3 = scmp.ge.s32.totalorder %s32_s10, 4   ;;  %s1806_s29 = sld [smem:[#allocation29_spill]] }
  0xe4   : > { %s1807_s24 = sld [smem:[#allocation28_spill]]  ;;  %s1808_s27 = smov %s1293_s28 }
  0xe5   : > { %s1810_s30 = smov %s1305_s9 }
  0xe6   :  { %31 = sbr.rel (!%p29_p3) target bundleno = 21 (0x15), region = 145 }
  0xe8   : > { %s1809_s28 = smov %s1805_s20 }
  0xea   : > { %s1811_s9 = smov %s1807_s24 }
  0xeb   :  { %704 = vsyncpa [#allocation3], 1 }
  0xec   :  { %706 = vsyncpa [#allocation3 + $0x1], 1 }
  0xed   :  { %707 = vsyncpa [#allocation17], 1 }
  0xee   :  { %709 = vsyncpa [#allocation17 + $0x1], 1 }
  0xef   :  { %710 = vsyncpa [#allocation4], 1 }
  0xf0   :  { %712 = vsyncpa [#allocation4 + $0x1], 1 }
  0xf1   :  { %713 = vsyncpa [#allocation5], 1 }
  0xf2   :  { %715 = vsyncpa [#allocation5 + $0x1], 1 }
  0xf3   :  { %716 = vsyncpa [#allocation9], 1 }
  0xf4   :  { %717 = vsyncpa [#allocation6], 1 }
  0xf5   :  { %719 = vsyncpa [#allocation6 + $0x1], 1 }
  0xf6   :  { %720 = vsyncpa [#allocation11], 1 }
  0xf7   :  { %721 = vsyncpa [#allocation14], 1 }

</bundles_post_ra>
